<compile_context>
chip_gen: v7x
topology: tpu7x:2x2x1
jax: 0.10.0
libtpu: 0.0.40
codegen_flags: <defaults>
</compile_context>

<pallas_src>
import math

import jax
import jax.numpy as jnp
from jax.experimental import pallas as pl
from jax.experimental.pallas import tpu as pltpu


LANES = 128
MAX_TILE_ROWS = 512  # (512, 128) f32 = 256 KiB per buffer


def affine_kernel(p_ref, x_ref, o_ref):
    # p_ref lives in SMEM: p_ref[0] = w_eff, p_ref[1] = b_eff.
    # Whole collapsed network is one VPU scalar-multiply-add over a lane-dense
    # (tile_rows, 128) tile.  No MXU involvement.
    o_ref[...] = x_ref[...] * p_ref[0] + p_ref[1]


def prepare_params(params):
    """Collapse the three Linear layers into (w_eff, b_eff) ONCE.

    Valid only because CircleModelV1 has no nonlinearity.  Returns a (2,)
    float32 array destined for SMEM.
    """
    w1, b1, w2, b2, w3, b3 = params
    w_eff = (w1 @ w2 @ w3).reshape(())                     # scalar
    b_eff = (b1 @ w2 @ w3 + b2 @ w3 + b3).reshape(())      # scalar
    return jnp.stack([w_eff, b_eff]).astype(jnp.float32)


@jax.jit
def circle_model_v1_forward(x, p):
    """x: (N, 1) f32.  p: (2,) f32 from prepare_params().  Returns (N, 1) f32."""
    n = x.shape[0]

    # Lane-dense slab: pad only to a multiple of 128 lanes; then round the row
    # count up to a multiple of the tile height for the gridded version.
    rows = pl.cdiv(n, LANES)
    tile_rows = min(rows, MAX_TILE_ROWS)
    rows_pad = pl.cdiv(rows, tile_rows) * tile_rows
    total = rows_pad * LANES

    x_flat = jnp.pad(x.reshape(-1).astype(jnp.float32), (0, total - n))
    x_slab = x_flat.reshape(rows_pad, LANES)

    out_slab = pl.pallas_call(
        affine_kernel,
        grid=(rows_pad // tile_rows,),
        out_shape=jax.ShapeDtypeStruct((rows_pad, LANES), jnp.float32),
        in_specs=[
            pl.BlockSpec(memory_space=pltpu.MemorySpace.SMEM),   # (2,) scalars
            pl.BlockSpec((tile_rows, LANES), lambda i: (i, 0)),  # x row tiles
        ],
        out_specs=pl.BlockSpec((tile_rows, LANES), lambda i: (i, 0)),
        input_output_aliases={1: 0},  # reuse the padded slab's HBM allocation
        compiler_params=pltpu.CompilerParams(
            dimension_semantics=("parallel",)),
    )(p, x_slab)

    # Padded tail rows compute 0*w_eff + b_eff and are sliced away here to
    # restore the exact PyTorch output shape; under jit this is a tiny slice.
    return out_slab.reshape(-1)[:n].reshape(n, 1)


def init_linear(key, fan_in, fan_out):
    # Deterministic init mimicking PyTorch's default uniform(-1/sqrt(fan_in), 1/sqrt(fan_in)).
    kw, kb = jax.random.split(key)
    bound = 1.0 / math.sqrt(fan_in)
    # Stored as (in, out) so forward is x @ W + b.
    w = jax.random.uniform(kw, (fan_in, fan_out), jnp.float32, -bound, bound)
    b = jax.random.uniform(kb, (1, fan_out), jnp.float32, -bound, bound)
    return w, b


def reference(x, params):
    # Layer-by-layer reference, identical to the PyTorch forward pass.
    w1, b1, w2, b2, w3, b3 = params
    z = x @ w1 + b1
    z = z @ w2 + b2
    z = z @ w3 + b3
    return z


if __name__ == "__main__":
    key = jax.random.PRNGKey(0)
    k1, k2, k3 = jax.random.split(key, 3)

    # Parameters: Linear(1,10), Linear(10,10), Linear(10,1)
    w1, b1 = init_linear(k1, 1, 10)
    w2, b2 = init_linear(k2, 10, 10)
    w3, b3 = init_linear(k3, 10, 1)
    params = (w1, b1, w2, b2, w3, b3)

    # One-time parameter preparation (collapse hoisted out of the forward path).
    p = jax.block_until_ready(prepare_params(params))

    # x = torch.arange(0, 1, 0.01).unsqueeze(1)  ->  shape (100, 1)
    x = jnp.arange(0.0, 1.0, 0.01, dtype=jnp.float32)[:, None]

    out = jax.block_until_ready(circle_model_v1_forward(x, p))
    ref = reference(x, params)

    assert out.shape == (100, 1)
    # Note: the collapse changes f32 summation order vs layer-by-layer; it is
    # not bit-identical but passes at these tolerances.
    assert jnp.allclose(out, ref, atol=1e-5, rtol=1e-5)

    print("KERNEL_OK")
</pallas_src>

<mosaic_0001>
module attributes {stable_mosaic.version = 11 : i64} {
  func.func @affine_kernel(%arg0: i32, %arg1: memref<2xf32, #tpu.memory_space<smem>>, %arg2: memref<1x128xf32, #tpu.memory_space<vmem>>, %arg3: memref<1x128xf32, #tpu.memory_space<vmem>>) attributes {dimension_semantics = [#tpu.dimension_semantics<parallel>], iteration_bounds = array<i64: 1>, scalar_prefetch = 0 : i64, scratch_operands = 0 : i64, tpu.core_type = #tpu.core_type<tc>, window_params = [{transform_indices = @transform_0, window_bounds = array<i64: 2>}, {transform_indices = @transform_1, window_bounds = array<i64: 1, 128>}, {transform_indices = @transform_2, window_bounds = array<i64: 1, 128>}]} {
    %c0 = arith.constant 0 : index
    %c0_0 = arith.constant 0 : index
    %0 = vector.load %arg2[%c0, %c0_0] : memref<1x128xf32, #tpu.memory_space<vmem>>, vector<1x128xf32>
    %c0_1 = arith.constant 0 : index
    %1 = memref.load %arg1[%c0_1] : memref<2xf32, #tpu.memory_space<smem>>
    %2 = vector.broadcast %1 : f32 to vector<1x128xf32>
    %3 = arith.mulf %0, %2 : vector<1x128xf32>
    %c1 = arith.constant 1 : index
    %4 = memref.load %arg1[%c1] : memref<2xf32, #tpu.memory_space<smem>>
    %5 = vector.broadcast %4 : f32 to vector<1x128xf32>
    %6 = arith.addf %3, %5 : vector<1x128xf32>
    %c0_2 = arith.constant 0 : index
    %c0_3 = arith.constant 0 : index
    %7 = vector.load %arg3[%c0_2, %c0_3] : memref<1x128xf32, #tpu.memory_space<vmem>>, vector<1x128xf32>
    tpu.vector_store %arg3[%c0_2, %c0_3], %6 {strides = array<i32>} : memref<1x128xf32, #tpu.memory_space<vmem>>, vector<1x128xf32>,
    return
  }
  func.func @transform_0(%arg0: i32) -> i32 {
    %c0_i32 = arith.constant 0 : i32
    %c0_i32_0 = arith.constant 0 : i32
    return %c0_i32 : i32
  }
  func.func @transform_1(%arg0: i32) -> (i32, i32) {
    %c0_i32 = arith.constant 0 : i32
    %c0_i32_0 = arith.constant 0 : i32
    return %arg0, %c0_i32 : i32, i32
  }
  func.func @transform_2(%arg0: i32) -> (i32, i32) {
    %c0_i32 = arith.constant 0 : i32
    %c0_i32_0 = arith.constant 0 : i32
    return %arg0, %c0_i32 : i32, i32
  }
}

</mosaic_0001>

<bundles_post_ra>
// kernel: circle_model_v1_forward.1
= control target key start
LH: loop header
LB: loop body
LE: loop exit
PB: predicated region body
PF: predicated region fallthrough
CT: control target
= control target key end

     0   :  { %7 = vsyncpa [#allocation3], 0  ;;  %s78_s0 = inlined_call_operand.vmem [shape: f32[2], index: 0, kind: input, shape index: {}]   ;;  %s79_s1 = inlined_call_operand.vmem [shape: f32[1,128], index: 1, kind: input, shape index: {}, may-alias: {1,2}]   ;;  %s80_s2 = inlined_call_operand.vmem [shape: f32[1,128], index: 2, kind: output, shape index: {}, may-alias: {1,2}]  }
   0x1   :  { %s14_s11 = sshll.u32 %s78_s0, 4  ;;  %s15_s11 = int_to_ptr.vmem [resolvable:$true] %s14_s11 }
   0x2   :  { %s39_s12 = scalar_lea.vmem %s15_s11, 16  ;;  %p44_p1 = scmp.lt.s32.totalorder %s15_s11, %s15_s11 }
   0x3   :  { %p40_p0 = scmp.ne.s32.totalorder %s15_s11, %s39_s12  ;;  %p45_p2 = scmp.lt.s32.totalorder %s39_s12, %s39_s12 }
   0x5   :  { %p46_p3 = por %p45_p2, %p44_p1 }
   0x7   :  { %p47_p4 = pnand %p46_p3, %p40_p0 }
   0x9   :  { %50 = shalt.err (!%p47_p4)
}
   0xa   :  { %s53_s13 = smov [#allocation2]  }
   0xb   :  { %17 = dma.vmem_to_smem %s15_s11, 16, %s53_s13, [#allocation3]  }
   0xc   :  { %51 = dma.done.wait [#allocation3], 16  }
   0xd   :  { %52 = vsyncadd [#allocation3], 4294967280 }
   0xe   :  { %23 = sfence }
   0xf   :  { %s25_s14 = sld [smem:[#allocation2]]  ;;  %s37_s15 = sld [smem:[#allocation2 + $0x1]]  ;;  %v24_v0 = vld [vmem:[%s79_s1] sm:$0x1] }
  0x15   :  { %v26_v1 = vstv %s25_s14  ;;  %v29_v2 = vstv %s37_s15 }
  0x16   :  { %v27_v3 = vmul.f32 %v26_v1, %v24_v0 }
  0x18   :  { %v30_v4 = vadd.f32 %v29_v2, %v27_v3 }
  0x1a   :  { %31 = vst [vmem:[%s80_s2] sm:$0x1] %v30_v4 }
  0x1b   :  { %36 = vsyncpa [#allocation3], 1 }

</bundles_post_ra>
